<compile_context>
chip_gen: v6e
topology: v6e:2x2x1
jax: 0.10.0
libtpu: 0.0.40
codegen_flags: <defaults>
</compile_context>

<pallas_src>
import functools

import jax
import jax.numpy as jnp
from jax.experimental import pallas as pl
from jax.experimental.pallas import tpu as pltpu


def _disc_scale_kernel(x_ref, w1_ref, b1_ref, w2_ref, b2_ref, w3_ref, b3_ref,
                       f1_ref, f2_ref, lg_ref, h_pad,
                       *, K, T, C, pad_l, pad_r, neg_slope):
    """Fused per-scale discriminator stack for one batch element.

    Layout: channels on sublanes, time on lanes.
      x_ref : (1, 1, T+K-1)   padded input (single channel)
      w1_ref: (C, K)          first layer weights (Cin == 1)
      w2_ref: (C, K*C)        im2col-folded weights, column index = k*C + cin
      w3_ref: (1, K*C)
      b*_ref: (C, 1) / (1, 1)
      f1_ref: (1, C, T)   f2_ref: (1, C, T)   lg_ref: (1, 1, T)
      h_pad : (C, T+K-1)  VMEM scratch (zero halo, reused for both intermediates)
    """
    x = x_ref[0]                                    # (1, Tp)

    # ---- layer 1: Cin = 1 -> VPU broadcast MAC (skip the MXU entirely) ----
    acc = jnp.zeros((C, T), jnp.float32)
    for k in range(K):                              # static unroll, K is small
        acc = acc + w1_ref[:, k:k + 1] * x[:, k:k + T]
    acc = acc + b1_ref[...]
    h1 = jnp.where(acc >= 0, acc, neg_slope * acc)
    f1_ref[0] = h1.astype(f1_ref.dtype)

    # Zero only the halo columns (interior is always overwritten below).
    if pad_l:
        h_pad[:, :pad_l] = jnp.zeros((C, pad_l), jnp.float32)
    if pad_r:
        h_pad[:, pad_l + T:] = jnp.zeros((C, pad_r), jnp.float32)
    h_pad[:, pad_l:pad_l + T] = h1

    # ---- layer 2: C -> C, K taps folded into ONE (C,K*C) @ (K*C,T) matmul ----
    h1p = h_pad[...]
    cols = jnp.concatenate([h1p[:, k:k + T] for k in range(K)], axis=0)   # (K*C, T)
    acc2 = jnp.dot(w2_ref[...], cols, preferred_element_type=jnp.float32)
    acc2 = acc2 + b2_ref[...]
    h2 = jnp.where(acc2 >= 0, acc2, neg_slope * acc2)
    f2_ref[0] = h2.astype(f2_ref.dtype)

    h_pad[:, pad_l:pad_l + T] = h2

    # ---- layer 3: C -> 1 logits (no activation) ----
    h2p = h_pad[...]
    cols2 = jnp.concatenate([h2p[:, k:k + T] for k in range(K)], axis=0)  # (K*C, T)
    lg = jnp.dot(w3_ref[...], cols2, preferred_element_type=jnp.float32)
    lg = lg + b3_ref[...]
    lg_ref[0] = lg.astype(lg_ref.dtype)


def disc_scale_forward(x_ncw, layers, *, neg_slope=0.1):
    """Run one scale's 3-layer Conv1d stack in a single fused pallas_call.

    x_ncw : (B, 1, T) float32 (PyTorch NCW layout; time is already the lane axis).
    layers: [(w1, b1), (w2, b2), (w3, b3)] with PyTorch Conv1d weight layout
            w: (Cout, Cin, K), b: (Cout,)
    returns [feat1 (B,C,T), feat2 (B,C,T), logits (B,1,T)]  (all NCW)
    """
    (w1, b1), (w2, b2), (w3, b3) = layers
    C, _, K = w2.shape
    B, _, T = x_ncw.shape
    pad_l = (K - 1) // 2
    pad_r = K - 1 - pad_l
    Tp = T + K - 1

    x_pad = jnp.pad(x_ncw, ((0, 0), (0, 0), (pad_l, pad_r)))          # (B, 1, Tp)
    w1_r = w1.reshape(C, K)                                           # Cin == 1
    # im2col weight layout: column index = k*C + cin (matches in-kernel concat)
    w2_r = jnp.transpose(w2, (0, 2, 1)).reshape(C, K * C)
    w3_r = jnp.transpose(w3, (0, 2, 1)).reshape(1, K * C)
    b1_r = b1.reshape(C, 1)
    b2_r = b2.reshape(C, 1)
    b3_r = b3.reshape(1, 1)

    kernel = functools.partial(
        _disc_scale_kernel, K=K, T=T, C=C, pad_l=pad_l, pad_r=pad_r,
        neg_slope=neg_slope)

    f1, f2, lg = pl.pallas_call(
        kernel,
        out_shape=(
            jax.ShapeDtypeStruct((B, C, T), jnp.float32),
            jax.ShapeDtypeStruct((B, C, T), jnp.float32),
            jax.ShapeDtypeStruct((B, 1, T), jnp.float32),
        ),
        grid=(B,),
        in_specs=[
            pl.BlockSpec((1, 1, Tp), lambda i: (i, 0, 0)),
            pl.BlockSpec((C, K), lambda i: (0, 0)),        # weights: constant
            pl.BlockSpec((C, 1), lambda i: (0, 0)),        # block index -> kept
            pl.BlockSpec((C, K * C), lambda i: (0, 0)),    # resident across grid
            pl.BlockSpec((C, 1), lambda i: (0, 0)),
            pl.BlockSpec((1, K * C), lambda i: (0, 0)),
            pl.BlockSpec((1, 1), lambda i: (0, 0)),
        ],
        out_specs=(
            pl.BlockSpec((1, C, T), lambda i: (i, 0, 0)),
            pl.BlockSpec((1, C, T), lambda i: (i, 0, 0)),
            pl.BlockSpec((1, 1, T), lambda i: (i, 0, 0)),
        ),
        scratch_shapes=[pltpu.VMEM((C, Tp), jnp.float32)],
        compiler_params=pltpu.CompilerParams(
            dimension_semantics=("parallel",)),
    )(x_pad, w1_r, b1_r, w2_r, b2_r, w3_r, b3_r)
    return [f1, f2, lg]


def _avg_pool2(x_ncw):
    """Stride-2 average pool along time (glue, plain JAX).
    TODO(synk): the real DAC discriminator uses AvgPool1d(4, 2, padding=2);
    this synthetic stand-in keeps kernel=2/stride=2 like the original port."""
    return 0.5 * (x_ncw[:, :, 0::2] + x_ncw[:, :, 1::2])


class SyntheticMultiScaleDiscriminator:
    """Stand-in for the DAC discriminator: n_scales sub-discriminators, each a
    3-layer Conv1d stack (1->C->C->1) run as ONE fused Pallas kernel per scale,
    returning [feat1, feat2, logits] per scale, all in NCW layout."""

    def __init__(self, key, n_scales=2, channels=32, kernel=3):
        self.n_scales = n_scales
        self.kernel = kernel
        self.params = []
        chans = [1, channels, channels, 1]
        for _ in range(n_scales):
            layers = []
            for li in range(len(chans) - 1):
                key, kw = jax.random.split(key)
                w = 0.02 * jax.random.normal(
                    kw, (chans[li + 1], chans[li], kernel), dtype=jnp.float32)
                b = jnp.zeros((chans[li + 1],), dtype=jnp.float32)
                layers.append((w, b))
            self.params.append(layers)

    def __call__(self, x_ncw):
        """x_ncw: (B, 1, T).  Returns list (per scale) of lists of feature maps
        (NCW); last element of each inner list is the logits."""
        outs = []
        xs = x_ncw
        for s, layers in enumerate(self.params):
            if s > 0:
                xs = _avg_pool2(xs)      # coarser scale (glue)
            # neg_slope=0.1 matches DAC's LeakyReLU (PyTorch default is 0.01).
            outs.append(disc_scale_forward(xs, layers, neg_slope=0.1))
        return outs


class DACGANLoss:
    """JAX/Pallas port of the PyTorch DACGANLoss module."""

    def __init__(self, discriminator):
        self.discriminator = discriminator

    def forward(self, fake, real):
        # Batch fake and real through ONE discriminator pass (doubles the
        # Pallas grid -> better pipelining / both v7x TCs busy, halves launch
        # and weight-DMA overhead), then split the results back out.  Conv /
        # pool are batch-independent, so this matches two separate calls.
        B = fake.shape[0]
        both = jnp.concatenate([fake, real], axis=0)
        d_both = self.discriminator(both)
        d_fake = [[f[:B] for f in feats] for feats in d_both]
        d_real = [[f[B:] for f in feats] for feats in d_both]
        return (d_fake, d_real)

    __call__ = forward

    def discriminator_loss(self, fake, real):
        # .clone().detach() -> stop_gradient (glue)
        d_fake, d_real = self.forward(jax.lax.stop_gradient(fake), real)
        loss_d = 0.0
        for x_fake, x_real in zip(d_fake, d_real):
            loss_d += jnp.mean(x_fake[-1] ** 2)
            loss_d += jnp.mean((1.0 - x_real[-1]) ** 2)
        return loss_d

    def generator_loss(self, fake, real):
        d_fake, d_real = self.forward(fake, real)
        loss_g = 0.0
        for x_fake in d_fake:
            loss_g += jnp.mean((1.0 - x_fake[-1]) ** 2)
        loss_feature = 0.0
        for i in range(len(d_fake)):
            for j in range(len(d_fake[i]) - 1):
                loss_feature += jnp.mean(
                    jnp.abs(d_fake[i][j] - jax.lax.stop_gradient(d_real[i][j])))
        return (loss_g, loss_feature)


def _reference_discriminator(x_ncw, disc, neg_slope=0.1):
    """Pure-JAX reference of the synthetic discriminator (correctness check)."""
    outs = []
    xs = x_ncw
    for s, layers in enumerate(disc.params):
        if s > 0:
            xs = _avg_pool2(xs)
        feats = []
        h = xs
        for li, (w, b) in enumerate(layers):
            K = w.shape[-1]
            pad_l = (K - 1) // 2
            pad_r = K - 1 - pad_l
            h = jax.lax.conv_general_dilated(
                h, w, window_strides=(1,), padding=((pad_l, pad_r),),
                dimension_numbers=("NCH", "OIH", "NCH")) + b[None, :, None]
            if li < len(layers) - 1:
                h = jnp.where(h >= 0, h, neg_slope * h)
            feats.append(h)
        outs.append(feats)
    return outs


if __name__ == "__main__":
    key = jax.random.PRNGKey(0)
    k_disc, k_fake, k_real = jax.random.split(key, 3)

    B, C, T = 2, 1, 128  # waveform-like NCW input (T=128 -> lane-dense outputs)
    fake = jax.random.normal(k_fake, (B, C, T), dtype=jnp.float32)
    real = jax.random.normal(k_real, (B, C, T), dtype=jnp.float32)

    disc = SyntheticMultiScaleDiscriminator(k_disc, n_scales=2, channels=32, kernel=3)
    gan = DACGANLoss(disc)

    d_fake, d_real = gan(fake, real)                # forward pass (fused Pallas convs)
    loss_d = gan.discriminator_loss(fake, real)     # reductions (plain JAX glue)
    loss_g, loss_feat = gan.generator_loss(fake, real)
    jax.block_until_ready((d_fake, d_real, loss_d, loss_g, loss_feat))

    # Lightweight correctness check against a pure-JAX reference.
    both = jnp.concatenate([fake, real], axis=0)
    ref = _reference_discriminator(both, disc, neg_slope=0.1)
    got = disc(both)
    for feats_got, feats_ref in zip(got, ref):
        for g, r in zip(feats_got, feats_ref):
            assert jnp.allclose(g, r, atol=1e-4, rtol=1e-4), "mismatch vs reference"

    print("KERNEL_OK")
</pallas_src>

<mosaic_0001>
module attributes {stable_mosaic.version = 11 : i64} {
  func.func @_disc_scale_kernel(%arg0: i32, %arg1: memref<1x1x130xf32, #tpu.memory_space<vmem>>, %arg2: memref<32x3xf32, #tpu.memory_space<vmem>>, %arg3: memref<32x1xf32, #tpu.memory_space<vmem>>, %arg4: memref<32x96xf32, #tpu.memory_space<vmem>>, %arg5: memref<32x1xf32, #tpu.memory_space<vmem>>, %arg6: memref<1x96xf32, #tpu.memory_space<vmem>>, %arg7: memref<1x1xf32, #tpu.memory_space<vmem>>, %arg8: memref<1x32x128xf32, #tpu.memory_space<vmem>>, %arg9: memref<1x32x128xf32, #tpu.memory_space<vmem>>, %arg10: memref<1x1x128xf32, #tpu.memory_space<vmem>>, %arg11: memref<32x130xf32, #tpu.memory_space<vmem>>) attributes {dimension_semantics = [#tpu.dimension_semantics<parallel>], iteration_bounds = array<i64: 4>, scalar_prefetch = 0 : i64, scratch_operands = 1 : i64, tpu.core_type = #tpu.core_type<tc>, window_params = [{transform_indices = @transform_0, window_bounds = array<i64: 1, 1, 130>}, {pipeline_mode = #tpu.pipeline_mode<synchronous>, transform_indices = @transform_1, window_bounds = array<i64: 32, 3>}, {pipeline_mode = #tpu.pipeline_mode<synchronous>, transform_indices = @transform_2, window_bounds = array<i64: 32, 1>}, {pipeline_mode = #tpu.pipeline_mode<synchronous>, transform_indices = @transform_3, window_bounds = array<i64: 32, 96>}, {pipeline_mode = #tpu.pipeline_mode<synchronous>, transform_indices = @transform_4, window_bounds = array<i64: 32, 1>}, {pipeline_mode = #tpu.pipeline_mode<synchronous>, transform_indices = @transform_5, window_bounds = array<i64: 1, 96>}, {pipeline_mode = #tpu.pipeline_mode<synchronous>, transform_indices = @transform_6, window_bounds = array<i64: 1, 1>}, {transform_indices = @transform_7, window_bounds = array<i64: 1, 32, 128>}, {transform_indices = @transform_8, window_bounds = array<i64: 1, 32, 128>}, {transform_indices = @transform_9, window_bounds = array<i64: 1, 1, 128>}]} {
    %c0 = arith.constant 0 : index
    %c0_0 = arith.constant 0 : index
    %c0_1 = arith.constant 0 : index
    %0 = vector.load %arg1[%c0, %c0_0, %c0_1] : memref<1x1x130xf32, #tpu.memory_space<vmem>>, vector<1x1x130xf32>
    %1 = vector.shape_cast %0 : vector<1x1x130xf32> to vector<1x130xf32>
    %cst = arith.constant 0.000000e+00 : f32
    %2 = vector.broadcast %cst : f32 to vector<32x128xf32>
    %c0_2 = arith.constant 0 : index
    %c0_3 = arith.constant 0 : index
    %3 = vector.load %arg2[%c0_2, %c0_3] : memref<32x3xf32, #tpu.memory_space<vmem>>, vector<32x1xf32>
    %4 = vector.extract_strided_slice %1 {offsets = [0, 0], sizes = [1, 128], strides = [1, 1]} : vector<1x130xf32> to vector<1x128xf32>
    %5 = vector.broadcast %3 : vector<32x1xf32> to vector<32x128xf32>
    %6 = vector.broadcast %4 : vector<1x128xf32> to vector<32x128xf32>
    %7 = arith.mulf %5, %6 : vector<32x128xf32>
    %8 = arith.addf %2, %7 : vector<32x128xf32>
    %c0_4 = arith.constant 0 : index
    %c1 = arith.constant 1 : index
    %9 = vector.load %arg2[%c0_4, %c1] : memref<32x3xf32, #tpu.memory_space<vmem>>, vector<32x1xf32>
    %10 = vector.extract_strided_slice %1 {offsets = [0, 1], sizes = [1, 128], strides = [1, 1]} : vector<1x130xf32> to vector<1x128xf32>
    %11 = vector.broadcast %9 : vector<32x1xf32> to vector<32x128xf32>
    %12 = vector.broadcast %10 : vector<1x128xf32> to vector<32x128xf32>
    %13 = arith.mulf %11, %12 : vector<32x128xf32>
    %14 = arith.addf %8, %13 : vector<32x128xf32>
    %c0_5 = arith.constant 0 : index
    %c2 = arith.constant 2 : index
    %15 = vector.load %arg2[%c0_5, %c2] : memref<32x3xf32, #tpu.memory_space<vmem>>, vector<32x1xf32>
    %16 = vector.extract_strided_slice %1 {offsets = [0, 2], sizes = [1, 128], strides = [1, 1]} : vector<1x130xf32> to vector<1x128xf32>
    %17 = vector.broadcast %15 : vector<32x1xf32> to vector<32x128xf32>
    %18 = vector.broadcast %16 : vector<1x128xf32> to vector<32x128xf32>
    %19 = arith.mulf %17, %18 : vector<32x128xf32>
    %20 = arith.addf %14, %19 : vector<32x128xf32>
    %c0_6 = arith.constant 0 : index
    %c0_7 = arith.constant 0 : index
    %21 = vector.load %arg3[%c0_6, %c0_7] : memref<32x1xf32, #tpu.memory_space<vmem>>, vector<32x1xf32>
    %22 = vector.broadcast %21 : vector<32x1xf32> to vector<32x128xf32>
    %23 = arith.addf %20, %22 : vector<32x128xf32>
    %cst_8 = arith.constant 0.000000e+00 : f32
    %24 = vector.broadcast %cst_8 : f32 to vector<32x128xf32>
    %25 = arith.cmpf oge, %23, %24 : vector<32x128xf32>
    %cst_9 = arith.constant 1.000000e-01 : f32
    %26 = vector.broadcast %cst_9 : f32 to vector<32x128xf32>
    %27 = arith.mulf %26, %23 : vector<32x128xf32>
    %28 = arith.select %25, %23, %27 : vector<32x128xi1>, vector<32x128xf32>
    %c0_10 = arith.constant 0 : index
    %c0_11 = arith.constant 0 : index
    %c0_12 = arith.constant 0 : index
    %29 = vector.load %arg8[%c0_10, %c0_11, %c0_12] : memref<1x32x128xf32, #tpu.memory_space<vmem>>, vector<1x32x128xf32>
    %30 = vector.shape_cast %29 : vector<1x32x128xf32> to vector<32x128xf32>
    %31 = vector.shape_cast %28 : vector<32x128xf32> to vector<1x32x128xf32>
    tpu.vector_store %arg8[%c0_10, %c0_11, %c0_12], %31 {strides = array<i32>} : memref<1x32x128xf32, #tpu.memory_space<vmem>>, vector<1x32x128xf32>,
    %cst_13 = arith.constant 0.000000e+00 : f32
    %32 = vector.broadcast %cst_13 : f32 to vector<32x1xf32>
    %c0_14 = arith.constant 0 : index
    %c0_15 = arith.constant 0 : index
    %33 = vector.load %arg11[%c0_14, %c0_15] : memref<32x130xf32, #tpu.memory_space<vmem>>, vector<32x1xf32>
    tpu.vector_store %arg11[%c0_14, %c0_15], %32 {strides = array<i32>} : memref<32x130xf32, #tpu.memory_space<vmem>>, vector<32x1xf32>,
    %cst_16 = arith.constant 0.000000e+00 : f32
    %34 = vector.broadcast %cst_16 : f32 to vector<32x1xf32>
    %c0_17 = arith.constant 0 : index
    %c129 = arith.constant 129 : index
    %35 = vector.load %arg11[%c0_17, %c129] : memref<32x130xf32, #tpu.memory_space<vmem>>, vector<32x1xf32>
    tpu.vector_store %arg11[%c0_17, %c129], %34 {strides = array<i32>} : memref<32x130xf32, #tpu.memory_space<vmem>>, vector<32x1xf32>,
    %c0_18 = arith.constant 0 : index
    %c1_19 = arith.constant 1 : index
    %36 = vector.load %arg11[%c0_18, %c1_19] : memref<32x130xf32, #tpu.memory_space<vmem>>, vector<32x128xf32>
    tpu.vector_store %arg11[%c0_18, %c1_19], %28 {strides = array<i32>} : memref<32x130xf32, #tpu.memory_space<vmem>>, vector<32x128xf32>,
    %c0_20 = arith.constant 0 : index
    %c0_21 = arith.constant 0 : index
    %37 = vector.load %arg11[%c0_20, %c0_21] : memref<32x130xf32, #tpu.memory_space<vmem>>, vector<32x130xf32>
    %38 = vector.extract_strided_slice %37 {offsets = [0, 0], sizes = [32, 128], strides = [1, 1]} : vector<32x130xf32> to vector<32x128xf32>
    %39 = vector.extract_strided_slice %37 {offsets = [0, 1], sizes = [32, 128], strides = [1, 1]} : vector<32x130xf32> to vector<32x128xf32>
    %40 = vector.extract_strided_slice %37 {offsets = [0, 2], sizes = [32, 128], strides = [1, 1]} : vector<32x130xf32> to vector<32x128xf32>
    %41 = tpu.concatenate %38, %39, %40 in 0 : vector<32x128xf32>, vector<32x128xf32>, vector<32x128xf32> -> vector<96x128xf32>
    %c0_22 = arith.constant 0 : index
    %c0_23 = arith.constant 0 : index
    %42 = vector.load %arg4[%c0_22, %c0_23] : memref<32x96xf32, #tpu.memory_space<vmem>>, vector<32x96xf32>
    %cst_24 = arith.constant dense<0.000000e+00> : vector<32x128xf32>
    %43 = tpu.matmul %42, %41, %cst_24 {dimension_numbers = #tpu.dot_dimension_numbers<[1], [0], [0], [1], [0, 0, 1, 1], [], []>} : vector<32x96xf32>, vector<96x128xf32>, vector<32x128xf32> -> vector<32x128xf32>
    %c0_25 = arith.constant 0 : index
    %c0_26 = arith.constant 0 : index
    %44 = vector.load %arg5[%c0_25, %c0_26] : memref<32x1xf32, #tpu.memory_space<vmem>>, vector<32x1xf32>
    %45 = vector.broadcast %44 : vector<32x1xf32> to vector<32x128xf32>
    %46 = arith.addf %43, %45 : vector<32x128xf32>
    %cst_27 = arith.constant 0.000000e+00 : f32
    %47 = vector.broadcast %cst_27 : f32 to vector<32x128xf32>
    %48 = arith.cmpf oge, %46, %47 : vector<32x128xf32>
    %cst_28 = arith.constant 1.000000e-01 : f32
    %49 = vector.broadcast %cst_28 : f32 to vector<32x128xf32>
    %50 = arith.mulf %49, %46 : vector<32x128xf32>
    %51 = arith.select %48, %46, %50 : vector<32x128xi1>, vector<32x128xf32>
    %c0_29 = arith.constant 0 : index
    %c0_30 = arith.constant 0 : index
    %c0_31 = arith.constant 0 : index
    %52 = vector.load %arg9[%c0_29, %c0_30, %c0_31] : memref<1x32x128xf32, #tpu.memory_space<vmem>>, vector<1x32x128xf32>
    %53 = vector.shape_cast %52 : vector<1x32x128xf32> to vector<32x128xf32>
    %54 = vector.shape_cast %51 : vector<32x128xf32> to vector<1x32x128xf32>
    tpu.vector_store %arg9[%c0_29, %c0_30, %c0_31], %54 {strides = array<i32>} : memref<1x32x128xf32, #tpu.memory_space<vmem>>, vector<1x32x128xf32>,
    %c0_32 = arith.constant 0 : index
    %c1_33 = arith.constant 1 : index
    %55 = vector.load %arg11[%c0_32, %c1_33] : memref<32x130xf32, #tpu.memory_space<vmem>>, vector<32x128xf32>
    tpu.vector_store %arg11[%c0_32, %c1_33], %51 {strides = array<i32>} : memref<32x130xf32, #tpu.memory_space<vmem>>, vector<32x128xf32>,
    %c0_34 = arith.constant 0 : index
    %c0_35 = arith.constant 0 : index
    %56 = vector.load %arg11[%c0_34, %c0_35] : memref<32x130xf32, #tpu.memory_space<vmem>>, vector<32x130xf32>
    %57 = vector.extract_strided_slice %56 {offsets = [0, 0], sizes = [32, 128], strides = [1, 1]} : vector<32x130xf32> to vector<32x128xf32>
    %58 = vector.extract_strided_slice %56 {offsets = [0, 1], sizes = [32, 128], strides = [1, 1]} : vector<32x130xf32> to vector<32x128xf32>
    %59 = vector.extract_strided_slice %56 {offsets = [0, 2], sizes = [32, 128], strides = [1, 1]} : vector<32x130xf32> to vector<32x128xf32>
    %60 = tpu.concatenate %57, %58, %59 in 0 : vector<32x128xf32>, vector<32x128xf32>, vector<32x128xf32> -> vector<96x128xf32>
    %c0_36 = arith.constant 0 : index
    %c0_37 = arith.constant 0 : index
    %61 = vector.load %arg6[%c0_36, %c0_37] : memref<1x96xf32, #tpu.memory_space<vmem>>, vector<1x96xf32>
    %cst_38 = arith.constant dense<0.000000e+00> : vector<1x128xf32>
    %62 = tpu.matmul %61, %60, %cst_38 {dimension_numbers = #tpu.dot_dimension_numbers<[1], [0], [0], [1], [0, 0, 1, 1], [], []>} : vector<1x96xf32>, vector<96x128xf32>, vector<1x128xf32> -> vector<1x128xf32>
    %c0_39 = arith.constant 0 : index
    %c0_40 = arith.constant 0 : index
    %63 = vector.load %arg7[%c0_39, %c0_40] : memref<1x1xf32, #tpu.memory_space<vmem>>, vector<1x1xf32>
    %64 = vector.broadcast %63 : vector<1x1xf32> to vector<1x128xf32>
    %65 = arith.addf %62, %64 : vector<1x128xf32>
    %c0_41 = arith.constant 0 : index
    %c0_42 = arith.constant 0 : index
    %c0_43 = arith.constant 0 : index
    %66 = vector.load %arg10[%c0_41, %c0_42, %c0_43] : memref<1x1x128xf32, #tpu.memory_space<vmem>>, vector<1x1x128xf32>
    %67 = vector.shape_cast %66 : vector<1x1x128xf32> to vector<1x128xf32>
    %68 = vector.shape_cast %65 : vector<1x128xf32> to vector<1x1x128xf32>
    tpu.vector_store %arg10[%c0_41, %c0_42, %c0_43], %68 {strides = array<i32>} : memref<1x1x128xf32, #tpu.memory_space<vmem>>, vector<1x1x128xf32>,
    return
  }
  func.func @transform_0(%arg0: i32) -> (i32, i32, i32) {
    %c0_i32 = arith.constant 0 : i32
    %c0_i32_0 = arith.constant 0 : i32
    %c0_i32_1 = arith.constant 0 : i32
    return %arg0, %c0_i32, %c0_i32_0 : i32, i32, i32
  }
  func.func @transform_1(%arg0: i32) -> (i32, i32) {
    %c0_i32 = arith.constant 0 : i32
    %c0_i32_0 = arith.constant 0 : i32
    %c0_i32_1 = arith.constant 0 : i32
    return %c0_i32, %c0_i32_0 : i32, i32
  }
  func.func @transform_2(%arg0: i32) -> (i32, i32) {
    %c0_i32 = arith.constant 0 : i32
    %c0_i32_0 = arith.constant 0 : i32
    %c0_i32_1 = arith.constant 0 : i32
    return %c0_i32, %c0_i32_0 : i32, i32
  }
  func.func @transform_3(%arg0: i32) -> (i32, i32) {
    %c0_i32 = arith.constant 0 : i32
    %c0_i32_0 = arith.constant 0 : i32
    %c0_i32_1 = arith.constant 0 : i32
    return %c0_i32, %c0_i32_0 : i32, i32
  }
  func.func @transform_4(%arg0: i32) -> (i32, i32) {
    %c0_i32 = arith.constant 0 : i32
    %c0_i32_0 = arith.constant 0 : i32
    %c0_i32_1 = arith.constant 0 : i32
    return %c0_i32, %c0_i32_0 : i32, i32
  }
  func.func @transform_5(%arg0: i32) -> (i32, i32) {
    %c0_i32 = arith.constant 0 : i32
    %c0_i32_0 = arith.constant 0 : i32
    %c0_i32_1 = arith.constant 0 : i32
    return %c0_i32, %c0_i32_0 : i32, i32
  }
  func.func @transform_6(%arg0: i32) -> (i32, i32) {
    %c0_i32 = arith.constant 0 : i32
    %c0_i32_0 = arith.constant 0 : i32
    %c0_i32_1 = arith.constant 0 : i32
    return %c0_i32, %c0_i32_0 : i32, i32
  }
  func.func @transform_7(%arg0: i32) -> (i32, i32, i32) {
    %c0_i32 = arith.constant 0 : i32
    %c0_i32_0 = arith.constant 0 : i32
    %c0_i32_1 = arith.constant 0 : i32
    return %arg0, %c0_i32, %c0_i32_0 : i32, i32, i32
  }
  func.func @transform_8(%arg0: i32) -> (i32, i32, i32) {
    %c0_i32 = arith.constant 0 : i32
    %c0_i32_0 = arith.constant 0 : i32
    %c0_i32_1 = arith.constant 0 : i32
    return %arg0, %c0_i32, %c0_i32_0 : i32, i32, i32
  }
  func.func @transform_9(%arg0: i32) -> (i32, i32, i32) {
    %c0_i32 = arith.constant 0 : i32
    %c0_i32_0 = arith.constant 0 : i32
    %c0_i32_1 = arith.constant 0 : i32
    return %arg0, %c0_i32, %c0_i32_0 : i32, i32, i32
  }
}

</mosaic_0001>

<bundles_post_ra>
// kernel: tpu_custom_call.1
= control target key start
LH: loop header
LB: loop body
LE: loop exit
PB: predicated region body
PF: predicated region fallthrough
CT: control target
= control target key end

     0   :  { %s1918_s0 = inlined_call_operand.vmem [shape: f32[4,1,130], index: 0, kind: input, shape index: {}]   ;;  %s1919_s1 = inlined_call_operand.vmem [shape: f32[32,3], index: 1, kind: input, shape index: {}]   ;;  %s1920_s2 = inlined_call_operand.vmem [shape: f32[32,1], index: 2, kind: input, shape index: {}]   ;;  %s1921_s3 = inlined_call_operand.vmem [shape: f32[32,96], index: 3, kind: input, shape index: {}]   ;;  %s1922_s4 = inlined_call_operand.vmem [shape: f32[32,1], index: 4, kind: input, shape index: {}]   ;;  %s1923_s5 = inlined_call_operand.vmem [shape: f32[1,96], index: 5, kind: input, shape index: {}]   ;;  %s1924_s6 = inlined_call_operand.<no memory space> [shape: f32[1,1], index: 6, kind: input, shape index: {}]   ;;  %s1925_s7 = inlined_call_operand.hbm [shape: f32[4,32,128], index: 7, kind: output, shape index: {0}]   ;;  %s1926_s8 = inlined_call_operand.hbm [shape: f32[4,32,128], index: 8, kind: output, shape index: {1}]   ;;  %s1927_s9 = inlined_call_operand.hbm [shape: f32[4,1,128], index: 9, kind: output, shape index: {2}]  }
   0x1   :  { %1932 = sst [smem:[#allocation11_spill]] %s1918_s0  ;;  %v15_v0 = vstv %s1924_s6 }
   0x2   :  { %1933 = sst [smem:[#allocation12_spill]] %s1919_s1  ;;  %16 = vst [vmem:[#allocation3] sm:$0x1] %v15_v0 }
   0x3   :  { %1934 = sst [smem:[#allocation13_spill]] %s1920_s2 }
   0x4   :  { %17 = vsyncpa [#allocation5], 0 }
   0x5   :  { %19 = vsyncpa [#allocation5 + $0x1], 0 }
   0x6   :  { %20 = vsyncpa [#allocation7], 0 }
   0x7   :  { %22 = vsyncpa [#allocation7 + $0x1], 0  ;;  %s1501_s11 = smov 0   ;;  %s1503_s12 = smov 0  }
   0x8   :  { %s1505_s13 = smov 0   ;;  %s1507_s14 = smov 0  }
   0x9 LB: > { %s1522_s6 = sadd.s32 4294967295, %s1433_s14   ;;  %s1928_s15 = sadd.s32 4294967294, %s1433_s14   ;;  %s1433_s14 = sphi %s1507_s14, %s1946_s14   ;;  %s1429_s13 = sphi %s1505_s13, %s1945_s13   ;;  %s1425_s12 = sphi %s1503_s12, %s1944_s12   ;;  %s1421_s11 = sphi %s1501_s11, %s1943_s11  }
   0xa   : > { %s1526_s16 = sadd.s32 1, %s1433_s14   ;;  %s187_s17 = sadd.s32 1, %s1429_s13 }
   0xb   : > { %s184_s18 = ssub.s32 %s1433_s14, %s1526_s16  ;;  %p197_p0 = scmp.ne.s32.totalorder %s1429_s13, %s1425_s12 }
   0xc   : > { %p185_p1 = scmp.eq.s32.totalorder %s184_s18, 0  ;;  %p198_p2 = scmp.eq.s32.totalorder %s1522_s6, 3 }
   0xd   : > { %p203_p3 = scmp.ne.s32.totalorder %s1425_s12, %s1421_s11  ;;  %p204_p4 = scmp.eq.s32.totalorder %s1928_s15, 3 }
   0xe   : > { %s1539_s19 = scalar_select %p185_p1, %s1429_s13, %s187_s17  }
   0xf   : > { %p1541_p5 = por %p198_p2, %p197_p0  ;;  %p1545_p6 = por %p204_p4, %p203_p3 }
  0x10   : > { %p1145_p7 = scmp.ge.s32.totalorder %s1433_s14, 1  ;;  %p299_p8 = scmp.lt.s32.totalorder %s1433_s14, 5 }
  0x12   : > { %p300_p9 = pnand %p1145_p7, %p299_p8 }
  0x13   : > { %s1937_s1 = sld [smem:[#allocation12_spill]] (!%p300_p9)  ;;  %p343_p10 = scmp.lt.s32.totalorder (!%p300_p9), %s1522_s6, 3 }
  0x14   : > { %303 = sbr.rel (%p300_p9) target bundleno = 1261 (0x4ed), region = 48  ;;  %s1938_s2 = sld [smem:[#allocation13_spill]] (!%p300_p9) }
  0x15   : > { %s1939_s0 = sld [smem:[#allocation11_spill]] (!%p300_p9)  ;;  %s1438_s10 = smov (!%p300_p9), 127  }
  0x16   : > { %s1929_s17 = smov (!%p300_p9), 126   ;;  %s1628_s18 = sand.u32 (!%p300_p9), 1, %s1425_s12  }
  0x17   : > { %s1146_s22 = sshll.u32 (!%p300_p9), %s1628_s18, 5  ;;  %s1441_s23 = smov (!%p300_p9), 1  }
  0x18   : > { %s1638_s24 = scalar_lea.vmem (!%p300_p9), [#allocation4], %s1146_s22  ;;  %s1739_s25 = scalar_lea.vmem (!%p300_p9), [#allocation6], %s1146_s22 }
  0x19   : > { %v351_v1 = vld [vmem:[%s1937_s1 + $0x18] sm:$0xff]  ;;  %v1435_v2 = vmov 1   ;;  %v1436_v3 = vmov 2   ;;  %v350_v4 = vld [vmem:[%s1937_s1 + $0x10] sm:$0xff]  ;;  %v349_v5 = vld [vmem:[%s1937_s1 + $0x8] sm:$0xff]  ;;  %v1437_v7 = vmov 0   ;;  %v373_v12 = vlaneseq }
  0x1a   : > { %1310 = vset.pattern.permute.xlu0 %v1435_v2  ;;  %1311 = vset.pattern.permute.xlu1 %v1436_v3  ;;  %v348_v6 = vld [vmem:[%s1937_s1] sm:$0xff]  ;;  %v516_v8 = vld [vmem:[%s1938_s2 + $0x18] sm:$0xff]  ;;  %v514_v9 = vld [vmem:[%s1938_s2 + $0x8] sm:$0xff]  ;;  %s344_s26 = scalar_select %p343_p10, %s1522_s6, 3  ;;  %vm557_vm0 = vcmask 7168   ;;  %vm562_vm1 = vcmask 15368  }
  0x1b   : > { %399 = vperm.xlu0 %1310, %v351_v1   ;;  %465 = vperm.xlu1 %1311, %v351_v1   ;;  %v515_v10 = vld [vmem:[%s1938_s2 + $0x10] sm:$0xff]  ;;  %v513_v11 = vld [vmem:[%s1938_s2] sm:$0xff]  ;;  %v1577_v13 = vshrl.u32 %v373_v12, 7  ;;  %v1440_v41 = vmov 0.0   ;;  %vm439_vm2 = vcmask 1039360   ;;  %vm500_vm3 = vcmask 1031168  }
  0x1c   : > { %s1148_s27 = sshll.u32 %s344_s26, 1  ;;  %561 = vst.msk [vmem:[#allocation2 + $0x30] sm:$0xff] %vm557_vm0, %v1440_v41  ;;  %558 = vst.msk [vmem:[#allocation2] sm:$0xff] %vm557_vm0, %v1440_v41  ;;  %1224 = vmatprep.subr.mxu1 %v1440_v41  ;;  %vm583_vm8 = vcmask 1047560   ;;  %vm684_vm9 = vcmask 785408   ;;  %s1940_s22 = smov 126  }
  0x1d   : > { %s346_s30 = scalar_lea.vmem %s1939_s0, %s1148_s27  ;;  %v375_v14 = vsub.s32 0, %v1577_v13  ;;  %v404_v15 = vsub.s32 1, %v1577_v13  ;;  %566 = vst.msk [vmem:[#allocation2 + $0x38] sm:$0xff] %vm562_vm1, %v1440_v41  ;;  %563 = vst.msk [vmem:[#allocation2 + $0x8] sm:$0xff] %vm562_vm1, %v1440_v41  ;;  %vm1442_vm14 = vmmov 0   ;;  %s1010_s26 = sshll.u32 %s1739_s25, 4  ;;  %s1811_s26 = int_to_ptr.vmem [resolvable:$true] %s1010_s26 }
  0x1e   : > { %v347_v16 = vld [vmem:[%s346_s30] sm:$0x3]  ;;  %559 = vst.msk [vmem:[#allocation2 + $0x10] sm:$0xff] %vm557_vm0, %v1440_v41  ;;  %560 = vst.msk [vmem:[#allocation2 + $0x20] sm:$0xff] %vm557_vm0, %v1440_v41  ;;  %1248 = vmatprep.mubr.msk.f32.mxu1 %vm1442_vm14, %v1440_v41  ;;  %s994_s15 = sshll.u32 %s1638_s24, 4  ;;  %s1931_s27 = sshll.u32 %s1522_s6, 9  ;;  %s1813_s15 = int_to_ptr.vmem [resolvable:$true] %s994_s15 }
  0x1f   : > { %395 = vperm.xlu0 %1310, %v350_v4   ;;  %1312 = vset.pattern.permute.xlu1 %v1435_v2  ;;  %v1586_v17 = vrot.slane %v347_v16, %v375_v14  ;;  %v405_v18 = vrot.slane %v347_v16, %v404_v15  ;;  %564 = vst.msk [vmem:[#allocation2 + $0x18] sm:$0xff] %vm562_vm1, %v1440_v41  ;;  %565 = vst.msk [vmem:[#allocation2 + $0x28] sm:$0xff] %vm562_vm1, %v1440_v41  ;;  %s1820_s30 = scalar_lea.hbm %s1926_s8, %s1931_s27 }
  0x20   : > { %391 = vperm.xlu1 %1312, %v349_v5  }
  0x23   : > { %1313 = vset.pattern.permute.xlu0 %v1436_v3 }
  0x24   : > { %461 = vperm.xlu0 %1313, %v350_v4   ;;  %387 = vperm.xlu1 %1312, %v348_v6  }
  0x28   : > { %453 = vperm.xlu0 %1313, %v348_v6   ;;  %1314 = vset.pattern.permute.xlu1 %v1436_v3 }
  0x29   : > { %457 = vperm.xlu1 %1314, %v349_v5  }
  0x2c   : > { %1316 = vset.pattern.permute.xlu0 %v1437_v7 }
  0x2d   : > { %1315 = vset.pattern.permute.xlu1 %v1437_v7  ;;  %364 = vperm.xlu0 %1316, %v350_v4  }
  0x2e   : > { %369 = vperm.xlu1 %1315, %v351_v1  }
  0x31   : > { %534 = vperm.xlu0 %1316, %v516_v8  }
  0x32   : > { %359 = vperm.xlu1 %1315, %v349_v5  }
  0x35   : > { %524 = vperm.xlu0 %1316, %v514_v9  }
  0x36   : > { %354 = vperm.xlu1 %1315, %v348_v6  }
  0x3a   : > { %529 = vperm.xlu1 %1315, %v515_v10  }
  0x3e   : > { %519 = vperm.xlu1 %1315, %v513_v11  }
  0x96   : > { %v400_v19 = vpop.permute.xlu0 %399  ;;  %v466_v22 = vpop.permute.xlu1 %465 }
  0x97   : > { %v413_v20 = vmul.f32 %v400_v19, %v1586_v17  ;;  %v414_v21 = vmul.f32 %v405_v18, %v400_v19  ;;  %v474_v26 = vmul.f32 %v466_v22, %v1586_v17  ;;  %v475_v27 = vmul.f32 %v466_v22, %v405_v18 }
  0x99   : > { %437 = vrot.lane.b32.xlu1 %v414_v21, %s1438_s10  ;;  %435 = vrot.lane.b32.xlu0 %v413_v20, %s1438_s10 }
  0x9a   : > { %v396_v23 = vpop.permute.xlu0 %395 }
  0x9b   : > { %v411_v24 = vmul.f32 %v396_v23, %v1586_v17  ;;  %v412_v25 = vmul.f32 %v405_v18, %v396_v23  ;;  %v392_v28 = vpop.permute.xlu1 %391 }
  0x9c   : > { %v409_v29 = vmul.f32 %v392_v28, %v1586_v17  ;;  %v410_v30 = vmul.f32 %v405_v18, %v392_v28 }
  0x9d   : > { %433 = vrot.lane.b32.xlu0 %v412_v25, %s1438_s10  ;;  %431 = vrot.lane.b32.xlu1 %v411_v24, %s1438_s10 }
  0x9f   : > { %v462_v31 = vpop.permute.xlu0 %461  ;;  %v388_v34 = vpop.permute.xlu1 %387 }
  0xa0   : > { %v472_v32 = vmul.f32 %v462_v31, %v1586_v17  ;;  %v473_v33 = vmul.f32 %v462_v31, %v405_v18  ;;  %v407_v36 = vmul.f32 %v388_v34, %v1586_v17  ;;  %v408_v37 = vmul.f32 %v405_v18, %v388_v34 }
  0xa1   : > { %498 = vrot.lane.b32.xlu0 %v475_v27, %s1929_s17  ;;  %496 = vrot.lane.b32.xlu1 %v474_v26, %s1929_s17 }
  0xa3   : > { %v454_v40 = vpop.permute.xlu0 %453 }
  0xa4   : > { %v458_v35 = vpop.permute.xlu1 %457  ;;  %v468_v42 = vmul.f32 %v454_v40, %v1586_v17  ;;  %v469_v43 = vmul.f32 %v454_v40, %v405_v18 }
  0xa5   : > { %429 = vrot.lane.b32.xlu1 %v410_v30, %s1438_s10  ;;  %427 = vrot.lane.b32.xlu0 %v409_v29, %s1438_s10  ;;  %v470_v38 = vmul.f32 %v458_v35, %v1586_v17  ;;  %v471_v39 = vmul.f32 %v458_v35, %v405_v18 }
  0xa8   : > { %v365_v47 = vpop.permute.xlu0 %364 }
  0xa9   : > { %494 = vrot.lane.b32.xlu1 %v473_v33, %s1929_s17  ;;  %492 = vrot.lane.b32.xlu0 %v472_v32, %s1929_s17  ;;  %v370_v44 = vpop.permute.xlu1 %369  ;;  %v380_v3 = vmul.f32 %v1586_v17, %v365_v47 }
  0xaa   : > { %v381_v57 = vmul.f32 %v1586_v17, %v370_v44 }
  0xac   : > { %v535_v49 = vpop.permute.xlu0 %534 }
  0xad   : > { %425 = vrot.lane.b32.xlu0 %v408_v37, %s1438_s10  ;;  %423 = vrot.lane.b32.xlu1 %v407_v36, %s1438_s10  ;;  %v360_v45 = vpop.permute.xlu1 %359 }
  0xae   : > { %v379_v18 = vmul.f32 %v1586_v17, %v360_v45 }
  0xb0   : > { %v525_v51 = vpop.permute.xlu0 %524 }
  0xb1   : > { %490 = vrot.lane.b32.xlu0 %v471_v39, %s1929_s17  ;;  %488 = vrot.lane.b32.xlu1 %v470_v38, %s1929_s17  ;;  %v355_v46 = vpop.permute.xlu1 %354 }
  0xb2   : > { %v378_v26 = vmul.f32 %v1586_v17, %v355_v46 }
  0xb5   : > { %484 = vrot.lane.b32.xlu0 %v468_v42, %s1929_s17  ;;  %486 = vrot.lane.b32.xlu1 %v469_v43, %s1929_s17  ;;  %v530_v48 = vpop.permute.xlu1 %529 }
  0xb9   : > { %v520_v50 = vpop.permute.xlu1 %519 }
 0x10b   : > { %v438_v52 = vpop.permute.xlu1 %437  ;;  %v436_v53 = vpop.permute.xlu0 %435 }
 0x10c   : > { %v443_v56 = vsel %vm439_vm2, %v436_v53, %v438_v52  ;;  %v662_v52 = vld [vmem:[%s1922_s4 + $0x10] sm:$0xff]  ;;  %v663_v53 = vld [vmem:[%s1922_s4 + $0x18] sm:$0xff] }
 0x10d   : > { %v451_v58 = vadd.f32 %v443_v56, %v381_v57 }
 0x10f   : > { %v434_v54 = vpop.permute.xlu0 %433  ;;  %v432_v55 = vpop.permute.xlu1 %431 }
 0x110   : > { %v442_v2 = vsel %vm439_vm2, %v432_v55, %v434_v54  ;;  %v660_v54 = vld [vmem:[%s1922_s4] sm:$0xff]  ;;  %v661_v55 = vld [vmem:[%s1922_s4 + $0x8] sm:$0xff] }
 0x111   : > { %v450_v5 = vadd.f32 %v442_v2, %v380_v3 }
 0x113   : > { %v499_v59 = vpop.permute.xlu0 %498  ;;  %v497_v60 = vpop.permute.xlu1 %496 }
 0x114   : > { %v504_v61 = vsel %vm500_vm3, %v497_v60, %v499_v59 }
 0x115   : > { %v512_v62 = vadd.f32 %v504_v61, %v451_v58 }
 0x117   : > { %v540_v63 = vadd.f32 %v535_v49, %v512_v62  ;;  %v430_v0 = vpop.permute.xlu1 %429  ;;  %v428_v1 = vpop.permute.xlu0 %427 }
 0x118   : > { %v441_v16 = vsel %vm439_vm2, %v428_v1, %v430_v0 }
 0x119   : > { %vm544_vm4 = vcmp.ge.f32.partialorder %v540_v63, 0.0  ;;  %v548_v4 = vmul.f32 0.1, %v540_v63  ;;  %v449_v20 = vadd.f32 %v441_v16, %v379_v18 }
 0x11b   : > { %v495_v6 = vpop.permute.xlu1 %494  ;;  %v493_v7 = vpop.permute.xlu0 %492  ;;  %v552_v8 = vsel %vm544_vm4, %v540_v63, %v548_v4 }
 0x11c   : > { %v503_v9 = vsel %vm500_vm3, %v493_v7, %v495_v6  ;;  %577 = vrot.lane.b32.xlu0 %v552_v8, %s1441_s23  ;;  %556 = vst [vmem:[%s1638_s24 + $0x18] sm:$0xff] %v552_v8 }
 0x11d   : > { %v511_v10 = vadd.f32 %v503_v9, %v450_v5 }
 0x11f   : > { %v539_v11 = vadd.f32 %v530_v48, %v511_v10  ;;  %v426_v12 = vpop.permute.xlu0 %425  ;;  %v424_v15 = vpop.permute.xlu1 %423 }
 0x120   : > { %v440_v24 = vsel %vm439_vm2, %v424_v15, %v426_v12 }
 0x121   : > { %vm543_vm5 = vcmp.ge.f32.partialorder %v539_v11, 0.0  ;;  %v547_v19 = vmul.f32 0.1, %v539_v11  ;;  %v448_v28 = vadd.f32 %v440_v24, %v378_v26 }
 0x123   : > { %v491_v21 = vpop.permute.xlu0 %490  ;;  %v489_v22 = vpop.permute.xlu1 %488  ;;  %v551_v23 = vsel %vm543_vm5, %v539_v11, %v547_v19  ;;  %v657_v19 = vld [vmem:[%s1921_s3 + $0x8] sm:$0xff] }
 0x124   : > { %v502_v25 = vsel %vm500_vm3, %v489_v22, %v491_v21  ;;  %575 = vrot.lane.b32.xlu1 %v551_v23, %s1441_s23  ;;  %555 = vst [vmem:[%s1638_s24 + $0x10] sm:$0xff] %v551_v23  ;;  %v659_v21 = vld [vmem:[%s1921_s3 + $0x18] sm:$0xff] }
 0x125   : > { %v510_v27 = vadd.f32 %v502_v25, %v449_v20  ;;  %v658_v20 = vld [vmem:[%s1921_s3 + $0x10] sm:$0xff] }
 0x127   : > { %v538_v29 = vadd.f32 %v525_v51, %v510_v27  ;;  %v485_v30 = vpop.permute.xlu0 %484  ;;  %v487_v31 = vpop.permute.xlu1 %486  ;;  %v656_v51 = vld [vmem:[%s1921_s3] sm:$0xff] }
 0x128   : > { %v501_v32 = vsel %vm500_vm3, %v485_v30, %v487_v31  ;;  %1218 = vmatprep.mubr.msk.f32.mxu0 %vm684_vm9, %v656_v51 }
 0x129   : > { %v509_v33 = vadd.f32 %v501_v32, %v448_v28  ;;  %vm542_vm6 = vcmp.ge.f32.partialorder %v538_v29, 0.0  ;;  %v546_v34 = vmul.f32 0.1, %v538_v29 }
 0x12b   : > { %v537_v35 = vadd.f32 %v520_v50, %v509_v33  ;;  %v550_v36 = vsel %vm542_vm6, %v538_v29, %v546_v34 }
 0x12c   : > { %573 = vrot.lane.b32.xlu0 %v550_v36, %s1441_s23  ;;  %554 = vst [vmem:[%s1638_s24 + $0x8] sm:$0xff] %v550_v36 }
 0x12d   : > { %vm541_vm7 = vcmp.ge.f32.partialorder %v537_v35, 0.0  ;;  %v545_v37 = vmul.f32 0.1, %v537_v35 }
 0x12f   : > { %v549_v38 = vsel %vm541_vm7, %v537_v35, %v545_v37 }
 0x130   : > { %571 = vrot.lane.b32.xlu1 %v549_v38, %s1441_s23  ;;  %553 = vst [vmem:[%s1638_s24] sm:$0xff] %v549_v38  ;;  %s1443_s24 = smov [#allocation6]  }
 0x18e   : > { %v578_v17 = vpop.permute.xlu0 %577 }
 0x18f   : > { %590 = vst.msk [vmem:[#allocation2 + $0x30] sm:$0xff] %vm583_vm8, %v578_v17 }
 0x190   : > { %591 = vst.msk [vmem:[#allocation2 + $0x38] sm:$0xff] %vm557_vm0, %v578_v17 }
 0x196   : > { %v576_v39 = vpop.permute.xlu1 %575  ;;  %v1655_v40 = vld [vmem:[#allocation2 + $0x30] sm:$0xff] }
 0x197   : > { %v599_v42 = vld [vmem:[#allocation2 + $0x38] sm:$0xff]  ;;  %588 = vst.msk [vmem:[#allocation2 + $0x20] sm:$0xff] %vm583_vm8, %v576_v39  ;;  %644 = vrot.lane.b32.xlu0 %v1655_v40, %s1929_s17 }
 0x198   : > { %589 = vst.msk [vmem:[#allocation2 + $0x28] sm:$0xff] %vm557_vm0, %v576_v39  ;;  %646 = vrot.lane.b32.xlu1 %v599_v42, %s1929_s17 }
 0x19e   : > { %v574_v43 = vpop.permute.xlu0 %573  ;;  %v1662_v44 = vld [vmem:[#allocation2 + $0x20] sm:$0xff] }
 0x19f   : > { %v597_v45 = vld [vmem:[#allocation2 + $0x28] sm:$0xff]  ;;  %586 = vst.msk [vmem:[#allocation2 + $0x10] sm:$0xff] %vm583_vm8, %v574_v43  ;;  %640 = vrot.lane.b32.xlu0 %v1662_v44, %s1929_s17 }
 0x1a0   : > { %587 = vst.msk [vmem:[#allocation2 + $0x18] sm:$0xff] %vm557_vm0, %v574_v43  ;;  %642 = vrot.lane.b32.xlu1 %v597_v45, %s1929_s17 }
 0x1a2   : > { %v572_v46 = vpop.permute.xlu1 %571 }
 0x1a3   : > { %584 = vst.msk [vmem:[#allocation2] sm:$0xff] %vm583_vm8, %v572_v46 }
 0x1a4   : > { %585 = vst.msk [vmem:[#allocation2 + $0x8] sm:$0xff] %vm557_vm0, %v572_v46 }
 0x1a6   : > { %v1671_v47 = vld [vmem:[#allocation2 + $0x10] sm:$0xff] }
 0x1a7   : > { %v595_v48 = vld [vmem:[#allocation2 + $0x18] sm:$0xff]  ;;  %636 = vrot.lane.b32.xlu0 %v1671_v47, %s1929_s17 }
 0x1a8   : > { %638 = vrot.lane.b32.xlu1 %v595_v48, %s1929_s17 }
 0x1aa   : > { %v1676_v50 = vld [vmem:[#allocation2] sm:$0xff] }
 0x1ab   : > { %v593_v49 = vld [vmem:[#allocation2 + $0x8] sm:$0xff]  ;;  %632 = vrot.lane.b32.xlu0 %v1676_v50, %s1929_s17 }
 0x1ac   : > { %634 = vrot.lane.b32.xlu1 %v593_v49, %s1929_s17  ;;  %s976_s17 = sand.u32 1, %s1522_s6  }
 0x1af   : > { %620 = vrot.lane.b32.xlu0 %v1655_v40, %s1438_s10 }
 0x1b0   : > { %622 = vrot.lane.b32.xlu1 %v599_v42, %s1438_s10 }
 0x1b3   : > { %616 = vrot.lane.b32.xlu0 %v1662_v44, %s1438_s10 }
 0x1b4   : > { %618 = vrot.lane.b32.xlu1 %v597_v45, %s1438_s10 }
 0x1b7   : > { %612 = vrot.lane.b32.xlu0 %v1671_v47, %s1438_s10 }
 0x1b8   : > { %614 = vrot.lane.b32.xlu1 %v595_v48, %s1438_s10 }
 0x1bb   : > { %608 = vrot.lane.b32.xlu0 %v1676_v50, %s1438_s10 }
 0x1bc   : > { %610 = vrot.lane.b32.xlu1 %v593_v49, %s1438_s10 }
 0x1bf   : > { %681 = vperm.xlu0 %1316, %v663_v53  }
 0x1c0   : > { %676 = vperm.xlu1 %1315, %v662_v52  }
 0x1c3   : > { %671 = vperm.xlu0 %1316, %v661_v55  }
 0x1c4   : > { %666 = vperm.xlu1 %1315, %v660_v54   ;;  %v887_v54 = vld [vmem:[#allocation3] sm:$0x1] }
 0x209   : > { %v645_v56 = vpop.permute.xlu0 %644 }
 0x20a   : > { %v647_v57 = vpop.permute.xlu1 %646 }
 0x20b   : > { %v651_v58 = vsel %vm500_vm3, %v645_v56, %v647_v57 }
 0x20c   : > { %1194 = vmatprep.subr.mxu0 %v651_v58 }
 0x20d   : > { %1195 = vmatpush3.msra.mxu0 %v651_v58 }
 0x211   : > { %v641_v59 = vpop.permute.xlu0 %640 }
 0x212   : > { %v643_v60 = vpop.permute.xlu1 %642 }
 0x213   : > { %v650_v61 = vsel %vm500_vm3, %v641_v59, %v643_v60 }
 0x214   : > { %1196 = vmatprep.subr.mxu0 %v650_v61 }
 0x215   : > { %1197 = vmatpush3.msra.mxu0 %v650_v61 }
 0x219   : > { %v637_v62 = vpop.permute.xlu0 %636 }
 0x21a   : > { %v639_v63 = vpop.permute.xlu1 %638 }
 0x21b   : > { %v649_v0 = vsel %vm500_vm3, %v637_v62, %v639_v63 }
 0x21c   : > { %1198 = vmatprep.subr.mxu0 %v649_v0 }
 0x21d   : > { %1199 = vmatpush3.msra.mxu0 %v649_v0  ;;  %v633_v1 = vpop.permute.xlu0 %632 }
 0x21e   : > { %v635_v2 = vpop.permute.xlu1 %634 }
 0x21f   : > { %v648_v3 = vsel %vm500_vm3, %v633_v1, %v635_v2 }
 0x220   : > { %1200 = vmatprep.subr.mxu0 %v648_v3 }
 0x221   : > { %1201 = vmatpush3.msra.mxu0 %v648_v3  ;;  %v621_v4 = vpop.permute.xlu0 %620 }
 0x222   : > { %v623_v5 = vpop.permute.xlu1 %622 }
 0x223   : > { %v627_v6 = vsel %vm439_vm2, %v621_v4, %v623_v5 }
 0x224   : > { %1202 = vmatprep.subr.mxu0 %v627_v6 }
 0x225   : > { %1203 = vmatpush3.msra.mxu0 %v627_v6  ;;  %v617_v7 = vpop.permute.xlu0 %616 }
 0x226   : > { %v619_v8 = vpop.permute.xlu1 %618 }
 0x227   : > { %v626_v9 = vsel %vm439_vm2, %v617_v7, %v619_v8 }
 0x228   : > { %1204 = vmatprep.subr.mxu0 %v626_v9 }
 0x229   : > { %1205 = vmatpush3.msra.mxu0 %v626_v9  ;;  %v613_v10 = vpop.permute.xlu0 %612 }
 0x22a   : > { %v615_v11 = vpop.permute.xlu1 %614 }
 0x22b   : > { %v625_v12 = vsel %vm439_vm2, %v613_v10, %v615_v11 }
 0x22c   : > { %1206 = vmatprep.subr.mxu0 %v625_v12 }
 0x22d   : > { %1207 = vmatpush3.msra.mxu0 %v625_v12  ;;  %v609_v15 = vpop.permute.xlu0 %608 }
 0x22e   : > { %v611_v16 = vpop.permute.xlu1 %610 }
 0x22f   : > { %v624_v18 = vsel %vm439_vm2, %v609_v15, %v611_v16 }
 0x230   : > { %1208 = vmatprep.subr.mxu0 %v624_v18 }
 0x231   : > { %1209 = vmatpush3.msra.mxu0 %v624_v18  ;;  %v886_v18 = vld [vmem:[%s1923_s5] sm:$0x1] }
 0x232   : > { %1210 = vmatprep.subr.mxu0 %v1655_v40 }
 0x233   : > { %1211 = vmatpush3.msra.mxu0 %v1655_v40 }
 0x234   : > { %1212 = vmatprep.subr.mxu0 %v1662_v44 }
 0x235   : > { %1213 = vmatpush3.msra.mxu0 %v1662_v44 }
 0x236   : > { %1214 = vmatprep.subr.mxu0 %v1671_v47 }
 0x237   : > { %1215 = vmatpush3.msra.mxu0 %v1671_v47 }
 0x238   : > { %1216 = vmatprep.subr.mxu0 %v1676_v50 }
 0x239   : > { %1217 = vmatpush3.msra.mxu0 %v1676_v50 }
 0x23a   : > { %1219 = vmatmul.mubr.msk.f32.vlgmr.msra.gmra.mxu0 %vm684_vm9, %v657_v19  ;;  %v682_v22 = vpop.permute.xlu0 %681 }
 0x23b   : > { %1221 = vmatprep.mubr.msk.f32.mxu0 %vm684_vm9, %v658_v20  ;;  %v677_v23 = vpop.permute.xlu1 %676 }
 0x23e   : > { %1222 = vmatmul.mubr.msk.f32.gmra.mxu0 %vm684_vm9, %v659_v21  ;;  %v672_v24 = vpop.permute.xlu0 %671 }
 0x23f   : > { %v667_v27 = vpop.permute.xlu1 %666 }
 0x2fa   : > { %v1220_v25 = vpop.f32.mrf.mxu0 }
 0x2fb   : > { %v769_v26 = vadd.f32 %v1220_v25, %v672_v24 }
 0x2fc   : > { %v763_v28 = vpop.f32.mrf.mxu0 }
 0x2fd   : > { %v787_v29 = vmul.f32 0.1, %v769_v26  ;;  %v764_v30 = vadd.f32 %v763_v28, %v667_v27  ;;  %vm783_vm10 = vcmp.ge.f32.partialorder %v769_v26, 0.0 }
 0x2fe   : > { %v1223_v31 = vpop.f32.mrf.mxu0 }
 0x2ff   : > { %v786_v32 = vmul.f32 0.1, %v764_v30  ;;  %v779_v33 = vadd.f32 %v1223_v31, %v682_v22  ;;  %v791_v34 = vsel %vm783_vm10, %v769_v26, %v787_v29  ;;  %vm782_vm11 = vcmp.ge.f32.partialorder %v764_v30, 0.0 }
 0x300   : > { %v773_v35 = vpop.f32.mrf.mxu0  ;;  %795 = vst [vmem:[%s1739_s25 + $0x8] sm:$0xff] %v791_v34 }
 0x301   : > { %v789_v36 = vmul.f32 0.1, %v779_v33  ;;  %v774_v37 = vadd.f32 %v773_v35, %v677_v23  ;;  %vm785_vm12 = vcmp.ge.f32.partialorder %v779_v33, 0.0  ;;  %v790_v38 = vsel %vm782_vm11, %v764_v30, %v786_v32 }
 0x302   : > { %794 = vst [vmem:[%s1739_s25] sm:$0xff] %v790_v38 }
 0x303   : > { %v788_v17 = vmul.f32 0.1, %v774_v37  ;;  %v793_v39 = vsel %vm785_vm12, %v779_v33, %v789_v36  ;;  %vm784_vm13 = vcmp.ge.f32.partialorder %v774_v37, 0.0 }
 0x304   : > { %808 = vrot.lane.b32.xlu0 %v793_v39, %s1441_s23  ;;  %797 = vst [vmem:[%s1739_s25 + $0x18] sm:$0xff] %v793_v39 }
 0x305   : > { %v792_v40 = vsel %vm784_vm13, %v774_v37, %v788_v17 }
 0x306   : > { %806 = vrot.lane.b32.xlu1 %v792_v40, %s1441_s23  ;;  %796 = vst [vmem:[%s1739_s25 + $0x10] sm:$0xff] %v792_v40  ;;  %s1321_s25 = sshll.u32 %s1443_s24, 4  ;;  %s1322_s25 = int_to_ptr.vmem [resolvable:$false] %s1321_s25 }
 0x307   : > { %p1324_p0 = scmp.lt.s32.totalorder %s1811_s26, %s1322_s25 }
 0x308   : > { %804 = vrot.lane.b32.xlu0 %v791_v34, %s1441_s23 }
 0x30a   : > { %802 = vrot.lane.b32.xlu1 %v790_v38, %s1441_s23  ;;  %s1323_s23 = scalar_lea.vmem %s1322_s25, 1024 }
 0x376   : > { %v809_v42 = vpop.permute.xlu0 %808 }
 0x377   : > { %820 = vst.msk [vmem:[#allocation2 + $0x30] sm:$0xff] %vm583_vm8, %v809_v42 }
 0x378   : > { %821 = vst.msk [vmem:[#allocation2 + $0x38] sm:$0xff] %vm557_vm0, %v809_v42  ;;  %v807_v43 = vpop.permute.xlu1 %806 }
 0x379   : > { %818 = vst.msk [vmem:[#allocation2 + $0x20] sm:$0xff] %vm583_vm8, %v807_v43 }
 0x37a   : > { %819 = vst.msk [vmem:[#allocation2 + $0x28] sm:$0xff] %vm557_vm0, %v807_v43  ;;  %v805_v44 = vpop.permute.xlu0 %804 }
 0x37b   : > { %816 = vst.msk [vmem:[#allocation2 + $0x10] sm:$0xff] %vm583_vm8, %v805_v44 }
 0x37c   : > { %817 = vst.msk [vmem:[#allocation2 + $0x18] sm:$0xff] %vm557_vm0, %v805_v44  ;;  %v803_v45 = vpop.permute.xlu1 %802 }
 0x37d   : > { %814 = vst.msk [vmem:[#allocation2] sm:$0xff] %vm583_vm8, %v803_v45 }
 0x37e   : > { %815 = vst.msk [vmem:[#allocation2 + $0x8] sm:$0xff] %vm557_vm0, %v803_v45  ;;  %v828_v51 = vld [vmem:[#allocation2 + $0x30] sm:$0xff] }
 0x37f   : > { %v829_v50 = vld [vmem:[#allocation2 + $0x38] sm:$0xff] }
 0x380   : > { %v826_v53 = vld [vmem:[#allocation2 + $0x20] sm:$0xff] }
 0x381   : > { %v827_v52 = vld [vmem:[#allocation2 + $0x28] sm:$0xff] }
 0x382   : > { %v1757_v46 = vld [vmem:[#allocation2 + $0x10] sm:$0xff] }
 0x383   : > { %v825_v47 = vld [vmem:[#allocation2 + $0x18] sm:$0xff]  ;;  %866 = vrot.lane.b32.xlu0 %v1757_v46, %s1940_s22 }
 0x384   : > { %868 = vrot.lane.b32.xlu1 %v825_v47, %s1940_s22  ;;  %v1762_v49 = vld [vmem:[#allocation2] sm:$0xff] }
 0x385   : > { %v823_v48 = vld [vmem:[#allocation2 + $0x8] sm:$0xff] }
 0x387   : > { %862 = vrot.lane.b32.xlu0 %v1762_v49, %s1940_s22 }
 0x388   : > { %864 = vrot.lane.b32.xlu1 %v823_v48, %s1940_s22 }
 0x38b   : > { %874 = vrot.lane.b32.xlu0 %v828_v51, %s1940_s22 }
 0x38c   : > { %876 = vrot.lane.b32.xlu1 %v829_v50, %s1940_s22 }
 0x38f   : > { %850 = vrot.lane.b32.xlu0 %v828_v51, %s1438_s10 }
 0x390   : > { %852 = vrot.lane.b32.xlu1 %v829_v50, %s1438_s10 }
 0x393   : > { %870 = vrot.lane.b32.xlu0 %v826_v53, %s1940_s22 }
 0x394   : > { %872 = vrot.lane.b32.xlu1 %v827_v52, %s1940_s22  ;;  %s1822_s22 = scalar_lea.sflag [#allocation7], %s976_s17 }
 0x397   : > { %842 = vrot.lane.b32.xlu0 %v1757_v46, %s1438_s10 }
 0x398   : > { %844 = vrot.lane.b32.xlu1 %v825_v47, %s1438_s10 }
 0x39b   : > { %846 = vrot.lane.b32.xlu0 %v826_v53, %s1438_s10 }
 0x39c   : > { %848 = vrot.lane.b32.xlu1 %v827_v52, %s1438_s10 }
 0x39f   : > { %838 = vrot.lane.b32.xlu0 %v1762_v49, %s1438_s10 }
 0x3a0   : > { %840 = vrot.lane.b32.xlu1 %v823_v48, %s1438_s10  ;;  %s1317_s10 = scalar_lea.vmem %s1811_s26, 512 }
 0x3a1   : > { %p1318_p11 = scmp.ne.s32.totalorder %s1811_s26, %s1317_s10  ;;  %p1325_p1 = scmp.lt.s32.totalorder %s1323_s23, %s1317_s10 }
 0x3a3   : > { %890 = vperm.xlu0 %1316, %v887_v54   ;;  %p1319_p12 = pnand %p1318_p11, %p1541_p5  ;;  %p1326_p2 = por %p1325_p1, %p1324_p0 }
 0x3a5   : > { %p1320_p13 = pneg %p1319_p12 }
 0x3a7   : > { %p1327_p3 = pnand %p1326_p2, %p1320_p13 }
 0x3f5   : > { %v867_v55 = vpop.permute.xlu0 %866 }
 0x3f6   : > { %v869_v56 = vpop.permute.xlu1 %868 }
 0x3f7   : > { %v879_v3 = vsel %vm500_vm3, %v867_v55, %v869_v56 }
 0x3f9   : > { %v863_v57 = vpop.permute.xlu0 %862 }
 0x3fa   : > { %v865_v58 = vpop.permute.xlu1 %864 }
 0x3fb   : > { %v878_v6 = vsel %vm500_vm3, %v863_v57, %v865_v58 }
 0x3fd   : > { %v875_v59 = vpop.permute.xlu0 %874 }
 0x3fe   : > { %v877_v60 = vpop.permute.xlu1 %876 }
 0x3ff   : > { %v881_v61 = vsel %vm500_vm3, %v875_v59, %v877_v60 }
 0x400   : > { %1225 = vmatpush3.msra.mxu1 %v881_v61 }
 0x401   : > { %1226 = vmatprep.subr.mxu1 %v1440_v41  ;;  %v851_v62 = vpop.permute.xlu0 %850 }
 0x402   : > { %v853_v63 = vpop.permute.xlu1 %852 }
 0x403   : > { %v857_v7 = vsel %vm439_vm2, %v851_v62, %v853_v63 }
 0x405   : > { %v871_v0 = vpop.permute.xlu0 %870 }
 0x406   : > { %v873_v1 = vpop.permute.xlu1 %872 }
 0x407   : > { %v880_v2 = vsel %vm500_vm3, %v871_v0, %v873_v1 }
 0x408   : > { %1227 = vmatpush3.msra.mxu1 %v880_v2 }
 0x409   : > { %1228 = vmatprep.subr.mxu1 %v1440_v41  ;;  %v843_v4 = vpop.permute.xlu0 %842 }
 0x40a   : > { %1229 = vmatpush3.msra.mxu1 %v879_v3  ;;  %v845_v5 = vpop.permute.xlu1 %844 }
 0x40b   : > { %1230 = vmatprep.subr.mxu1 %v1440_v41  ;;  %v855_v11 = vsel %vm439_vm2, %v843_v4, %v845_v5 }
 0x40c   : > { %1231 = vmatpush3.msra.mxu1 %v878_v6 }
 0x40d   : > { %1232 = vmatprep.subr.mxu1 %v1440_v41  ;;  %v847_v8 = vpop.permute.xlu0 %846 }
 0x40e   : > { %1233 = vmatpush3.msra.mxu1 %v857_v7  ;;  %v849_v9 = vpop.permute.xlu1 %848 }
 0x40f   : > { %1234 = vmatprep.subr.mxu1 %v1440_v41  ;;  %v856_v10 = vsel %vm439_vm2, %v847_v8, %v849_v9 }
 0x410   : > { %1235 = vmatpush3.msra.mxu1 %v856_v10 }
 0x411   : > { %1236 = vmatprep.subr.mxu1 %v1440_v41  ;;  %v839_v12 = vpop.permute.xlu0 %838 }
 0x412   : > { %1237 = vmatpush3.msra.mxu1 %v855_v11  ;;  %v841_v15 = vpop.permute.xlu1 %840 }
 0x413   : > { %1238 = vmatprep.subr.mxu1 %v1440_v41  ;;  %v854_v16 = vsel %vm439_vm2, %v839_v12, %v841_v15 }
 0x414   : > { %1239 = vmatpush3.msra.mxu1 %v854_v16 }
 0x415   : > { %1240 = vmatprep.subr.mxu1 %v1440_v41 }
 0x416   : > { %1241 = vmatpush3.msra.mxu1 %v828_v51 }
 0x417   : > { %1242 = vmatprep.subr.mxu1 %v1440_v41 }
 0x418   : > { %1243 = vmatpush3.msra.mxu1 %v826_v53 }
 0x419   : > { %1244 = vmatprep.subr.mxu1 %v1440_v41 }
 0x41a   : > { %1245 = vmatpush3.msra.mxu1 %v1757_v46 }
 0x41b   : > { %1246 = vmatprep.subr.mxu1 %v1440_v41 }
 0x41c   : > { %1247 = vmatpush3.msra.mxu1 %v1762_v49 }
 0x41d   : > { %1249 = vmatmul.mubr.msk.f32.vlgmr.msra.gmra.mxu1 %vm684_vm9, %v886_v18 }
 0x41e   : > { %1330 = shalt.err (!%p1327_p3)
}
 0x41f   : > { %s1331_s17 = scalar_lea.hbm %s1820_s30, 512  ;;  %s1335_s24 = scalar_lea.hbm %s1926_s8, 2048 }
 0x420   : > { %p1332_p4 = scmp.ne.s32.totalorder %s1820_s30, %s1331_s17  ;;  %p1336_p9 = scmp.lt.s32.totalorder %s1820_s30, %s1926_s8 }
 0x421   : > { %p1337_p10 = scmp.lt.s32.totalorder %s1335_s24, %s1331_s17 }
 0x422   : > { %p1333_p7 = pnand %p1332_p4, %p1541_p5 }
 0x423   : > { %p1338_p11 = por %p1337_p10, %p1336_p9 }
 0x424   : > { %p1334_p8 = pneg %p1333_p7 }
 0x426   : > { %p1339_p12 = pnand %p1338_p11, %p1334_p8 }
 0x428   : > { %1342 = shalt.err (!%p1339_p12)
}
 0x429   : > { %s1444_s10 = smov 128   ;;  %s1445_s25 = smov 8  }
 0x42a   : > { %1252 = dma.vmem_to_hbm [thread:$0]  (%p1541_p5), %s1811_s26, 512, %s1820_s30, %s1822_s22, %s1444_s10, %s1444_s10, %s1445_s25  }
 0x42b   : > { %s1941_s0 = sshll.u32 %s1522_s6, 9  ;;  %s972_s28 = scalar_lea.sflag [#allocation5], %s1628_s18 }
 0x42c   : > { %s1853_s17 = scalar_lea.hbm %s1925_s7, %s1941_s0  ;;  %s1343_s29 = scalar_lea.vmem %s1813_s15, 512 }
 0x42d   : > { %p1344_p13 = scmp.ne.s32.totalorder %s1813_s15, %s1343_s29  ;;  %s1446_s24 = smov [#allocation4]  }
 0x42e   : > { %s1347_s1 = sshll.u32 %s1446_s24, 4  ;;  %s1348_s1 = int_to_ptr.vmem [resolvable:$false] %s1347_s1 }
 0x42f   : > { %p1345_p0 = pnand %p1344_p13, %p1541_p5  ;;  %s1349_s2 = scalar_lea.vmem %s1348_s1, 1024 }
 0x430   : > { %p1350_p2 = scmp.lt.s32.totalorder %s1813_s15, %s1348_s1  ;;  %p1351_p3 = scmp.lt.s32.totalorder %s1349_s2, %s1343_s29 }
 0x431   : > { %p1346_p1 = pneg %p1345_p0 }
 0x432   : > { %p1352_p4 = por %p1351_p3, %p1350_p2 }
 0x434   : > { %p1353_p7 = pnand %p1352_p4, %p1346_p1 }
 0x436   : > { %1356 = shalt.err (!%p1353_p7)
}
 0x437   : > { %s1357_s26 = scalar_lea.hbm %s1853_s17, 512  ;;  %s1361_s27 = scalar_lea.hbm %s1925_s7, 2048 }
 0x438   : > { %p1358_p8 = scmp.ne.s32.totalorder %s1853_s17, %s1357_s26  ;;  %p1362_p11 = scmp.lt.s32.totalorder %s1853_s17, %s1925_s7 }
 0x439   : > { %p1363_p12 = scmp.lt.s32.totalorder %s1361_s27, %s1357_s26 }
 0x43a   : > { %p1359_p9 = pnand %p1358_p8, %p1541_p5 }
 0x43b   : > { %p1364_p13 = por %p1363_p12, %p1362_p11 }
 0x43c   : > { %p1360_p10 = pneg %p1359_p9 }
 0x43e   : > { %p1365_p0 = pnand %p1364_p13, %p1360_p10 }
 0x440   : > { %1368 = shalt.err (!%p1365_p0)
}
 0x441   : > { %1251 = dma.vmem_to_hbm [thread:$0]  (%p1541_p5), %s1813_s15, 512, %s1853_s17, %s972_s28, %s1444_s10, %s1444_s10, %s1445_s25   ;;  %v891_v41 = vpop.permute.xlu0 %890 }
 0x442   : > { %s342_s1 = scalar_lea.vmem [#allocation8], %s1628_s18  ;;  %s1160_s29 = sshll.u32 %s1522_s6, 4  ;;  %v896_v19 = vrot.slane %v891_v41, %v375_v14 }
 0x443   : > { %s1026_s2 = sshll.u32 %s342_s1, 4  ;;  %s1024_s0 = scalar_lea.hbm %s1927_s9, %s1160_s29  ;;  %s1027_s2 = int_to_ptr.vmem [resolvable:$true] %s1026_s2 }
 0x444   : > { %s1369_s27 = scalar_lea.vmem %s1027_s2, 16  ;;  %s1447_s18 = smov [#allocation8]  }
 0x445   : > { %p1370_p1 = scmp.ne.s32.totalorder %s1027_s2, %s1369_s27  ;;  %s1373_s15 = sshll.u32 %s1447_s18, 4  ;;  %s1374_s15 = int_to_ptr.vmem [resolvable:$false] %s1373_s15 }
 0x446   : > { %s1375_s6 = scalar_lea.vmem %s1374_s15, 32  ;;  %p1376_p4 = scmp.lt.s32.totalorder %s1027_s2, %s1374_s15 }
 0x447   : > { %p1371_p2 = pnand %p1370_p1, %p1541_p5  ;;  %p1377_p7 = scmp.lt.s32.totalorder %s1375_s6, %s1369_s27 }
 0x449   : > { %p1372_p3 = pneg %p1371_p2  ;;  %p1378_p8 = por %p1377_p7, %p1376_p4 }
 0x44b   : > { %p1379_p9 = pnand %p1378_p8, %p1372_p3 }
 0x4dd   : > { %v966_v20 = vpop.f32.mrf.mxu1 }
 0x4de   : > { %v967_v21 = vadd.f32 %v966_v20, %v896_v19 }
 0x4df   : > { %v1250_v22 = vpop.f32.mrf.mxu1 }
 0x4e0   : > { %970 = vst [vmem:[%s342_s1] sm:$0x1] %v967_v21 }
 0x4e1   : > { %1382 = shalt.err (!%p1379_p9)
}
 0x4e2   : > { %s1383_s10 = scalar_lea.hbm %s1024_s0, 16  ;;  %s1387_s28 = scalar_lea.hbm %s1927_s9, 64 }
 0x4e3   : > { %p1384_p10 = scmp.ne.s32.totalorder %s1024_s0, %s1383_s10  ;;  %p1388_p13 = scmp.lt.s32.totalorder %s1024_s0, %s1927_s9 }
 0x4e4   : > { %p1389_p0 = scmp.lt.s32.totalorder %s1387_s28, %s1383_s10 }
 0x4e5   : > { %p1385_p11 = pnand %p1384_p10, %p1541_p5 }
 0x4e6   : > { %p1390_p1 = por %p1389_p0, %p1388_p13 }
 0x4e7   : > { %p1386_p12 = pneg %p1385_p11 }
 0x4e9   : > { %p1391_p2 = pnand %p1390_p1, %p1386_p12 }
 0x4eb   : > { %1394 = shalt.err (!%p1391_p2)
}
 0x4ec   : > { %1253 = dma.vmem_to_hbm [thread:$0]  (%p1541_p5), %s1027_s2, 16, %s1024_s0, %s1822_s22  }
 0x4ed PF: > { %p1267_p3 = scmp.ge.s32.totalorder %s1433_s14, 2  ;;  %s1038_s1 = sand.u32 1, %s1421_s11  }
 0x4ee   : > { %s1039_s29 = scalar_lea.sflag [#allocation5], %s1038_s1 }
 0x4ef   : > { %p1258_p4 = pnand %p1267_p3, %p1545_p6 }
 0x4f1   : > { %p1259_p7 = pneg %p1258_p4 }
 0x4f3   : > { %1412 = dma.done.wait (%p1259_p7), %s1039_s29, 512  }
 0x4f4   : > { %1414 = vsyncadd (%p1259_p7), %s1039_s29, 4294966784  ;;  %s1942_s26 = sadd.s32 4294967294, %s1433_s14  }
 0x4f5   : > { %s1047_s30 = sand.u32 1, %s1942_s26  }
 0x4f6   : > { %s1048_s27 = scalar_lea.sflag [#allocation7], %s1047_s30 }
 0x4f7   : > { %1416 = dma.done.wait (%p1259_p7), %s1048_s27, 528  }
 0x4f8   : > { %1418 = vsyncadd (%p1259_p7), %s1048_s27, 4294966768  ;;  %p25_p5 = scmp.ge.s32.totalorder %s1526_s16, 6   ;;  %s1943_s11 = smov %s1425_s12 }
 0x4f9   : > { %s1944_s12 = smov %s1429_s13  ;;  %s1945_s13 = smov %s1539_s19 }
 0x4fa   : > { %s1946_s14 = smov %s1526_s16  ;;  %27 = sbr.rel (!%p25_p5) target bundleno = 9 (0x9), region = 115 }
 0x4ff   :  { %1061 = vsyncpa [#allocation5], 1 }
 0x500   :  { %1063 = vsyncpa [#allocation5 + $0x1], 1 }
 0x501   :  { %1064 = vsyncpa [#allocation7], 1 }
 0x502   :  { %1066 = vsyncpa [#allocation7 + $0x1], 1 }

</bundles_post_ra>
